<compile_context>
chip_gen: v5e
topology: v5e:2x2
jax: 0.10.0
libtpu: 0.0.40
codegen_flags: <defaults>
</compile_context>

<pallas_src>
import functools

import jax
import jax.numpy as jnp
from jax.experimental import pallas as pl
from jax.experimental.pallas import tpu as pltpu


# ------------------------------- kernel --------------------------------------

def footballnn_kernel(x_ref,
                      w1_ref, b1_ref,
                      w2_ref, b2_ref,
                      w3_ref, b3_ref,
                      w4_ref, b4_ref,
                      w5_ref, b5_ref,           # shrink3: (size_param, 4), (1, 4)
                      wf_ref, bf_ref,           # fc:      (4, 1),          (1, 1)
                      out_ref):
    """All 6 linear layers + sigmoids fused into one kernel (hot path)."""

    def sig(z):
        # logistic via one EUP tanh: sigmoid(z) = 0.5*tanh(0.5*z) + 0.5
        # (mul/add are VALU filler; avoids exp + Newton-refined divide).
        return 0.5 * jnp.tanh(0.5 * z) + 0.5

    def lin_sig(h, w_ref, b_ref):
        # bf16 MXU matmul, f32 accumulation; bias + sigmoid in f32.
        z = jnp.dot(h.astype(jnp.bfloat16), w_ref[...],
                    preferred_element_type=jnp.float32) + b_ref[...]
        return sig(z)

    h = lin_sig(x_ref[...], w1_ref, b1_ref)          # roster_scan_1 + sigmoid
    h = lin_sig(h, w2_ref, b2_ref)                   # roster_scan_2 + sigmoid
    h = lin_sig(h, w3_ref, b3_ref)                   # shrink        + sigmoid
    h = lin_sig(h, w4_ref, b4_ref)                   # shrink2       + sigmoid

    # Tail on the MXU (it is nearly idle: K<=64, N<=64 for the wide layers).
    # shrink3: one (tile_b,16)x(16,4) f32 matmul + ONE sigmoid on (tile_b,4).
    z4 = jnp.dot(h, w5_ref[...], preferred_element_type=jnp.float32) + b5_ref[...]
    h4 = sig(z4)                                     # (tile_b, 4)
    # fc: one tiny (tile_b,4)x(4,1) f32 matmul.
    out_ref[...] = (jnp.dot(h4, wf_ref[...], preferred_element_type=jnp.float32)
                    + bf_ref[...])


# ------------------------------ tiling helpers --------------------------------

_ALIGN = 16  # bf16 input rows: 16-row sublane packing


def _round_up(x, m):
    return ((x + m - 1) // m) * m


def _num_tensorcores():
    """Best-effort TensorCore-per-device count (v7x / v4 / v5p megacore -> 2)."""
    try:
        info = pltpu.get_tpu_info()
        for attr in ("num_cores", "core_count", "num_tensorcores"):
            v = getattr(info, attr, None)
            if isinstance(v, int) and v > 0:
                return v
    except Exception:
        pass
    try:
        kind = jax.devices()[0].device_kind.lower()
        if any(t in kind for t in ("v7", "7x", "v4", "v5p")):
            return 2
    except Exception:
        pass
    return 1


def _choose_tiling(batch, cap_override=None):
    """Pick (tile_b, padded_batch, n_steps): step count first, then tile size."""
    bp = _round_up(batch, _ALIGN)
    if cap_override is not None:
        cap = _round_up(max(int(cap_override), _ALIGN), _ALIGN)
    elif bp >= 8192:
        cap = 4096       # per-step VMEM is still <2 MiB — far under every limit
    else:
        cap = 2048
    n = max(1, -(-bp // cap))
    num_tc = _num_tensorcores()
    if num_tc > 1 and bp > 128:
        # balance the "parallel" grid axis across TensorCores (even split on v7x)
        n = _round_up(n, num_tc)
    tile_b = _round_up(-(-bp // n), _ALIGN)
    b_pad = n * tile_b   # padding is at most a few * _ALIGN rows
    return tile_b, b_pad, n


# ------------------------------- wrapper --------------------------------------

def prepare_params(params):
    """One-time kernel-layout prep: bf16 weights for the 4 wide MXU layers,
    f32 biases, f32 tail (shrink3 / fc).  Call once, reuse across forwards."""
    (w1, b1), (w2, b2), (w3, b3), (w4, b4), (w5, b5), (wf, bf) = params
    prepped = []
    for w, b in ((w1, b1), (w2, b2), (w3, b3), (w4, b4)):
        prepped.append((jnp.asarray(w, jnp.bfloat16), jnp.asarray(b, jnp.float32)))
    prepped.append((jnp.asarray(w5, jnp.float32), jnp.asarray(b5, jnp.float32)))
    prepped.append((jnp.asarray(wf, jnp.float32), jnp.asarray(bf, jnp.float32)))
    return tuple(prepped)


@functools.partial(jax.jit, static_argnames=("max_rows_per_step",))
def footballnn_forward(timeless, prepared_params, *, max_rows_per_step=None):
    """prepared_params: output of prepare_params(). Returns (B, 1) f32."""
    B, in_dim = timeless.shape
    x = timeless.astype(jnp.bfloat16)                # halve input HBM/VMEM bytes

    tile_b, b_pad, n_steps = _choose_tiling(B, cap_override=max_rows_per_step)
    if b_pad != B:
        x = jnp.pad(x, ((0, b_pad - B), (0, 0)))     # zero rows; sliced off below

    (w1, b1), (w2, b2), (w3, b3), (w4, b4), (w5, b5), (wf, bf) = prepared_params

    def const_spec(a):
        # constant index_map -> Pallas keeps the block VMEM-resident across steps
        return pl.BlockSpec(a.shape, lambda i: (0, 0))

    in_specs = [pl.BlockSpec((tile_b, in_dim), lambda i: (i, 0))]
    args = [x]
    for a in (w1, b1, w2, b2, w3, b3, w4, b4, w5, b5, wf, bf):
        in_specs.append(const_spec(a))
        args.append(a)

    out = pl.pallas_call(
        footballnn_kernel,
        out_shape=jax.ShapeDtypeStruct((b_pad, 1), jnp.float32),
        grid=(n_steps,),
        in_specs=in_specs,
        out_specs=pl.BlockSpec((tile_b, 1), lambda i: (i, 0)),
        compiler_params=pltpu.CompilerParams(
            dimension_semantics=("parallel",)),
    )(*args)
    return out[:B]


# ----------------- deterministic parameter init (mirrors init_weights) -------

def _xavier_normal(key, fan_in, fan_out, gain=1.0):
    std = gain * (2.0 / (fan_in + fan_out)) ** 0.5
    return std * jax.random.normal(key, (fan_in, fan_out), jnp.float32)


def _xavier_uniform(key, fan_in, fan_out, gain=1.0):
    limit = gain * (6.0 / (fan_in + fan_out)) ** 0.5
    return jax.random.uniform(key, (fan_in, fan_out), jnp.float32, -limit, limit)


def make_params(key, simulated_team_size):
    size_param = 2 * simulated_team_size
    dims = [
        (size_param, 4 * size_param),       # roster_scan_1
        (4 * size_param, 2 * size_param),   # roster_scan_2
        (2 * size_param, size_param),       # shrink
        (size_param, size_param),           # shrink2
        (size_param, 4),                    # shrink3
    ]
    keys = jax.random.split(key, len(dims) + 1)
    params = []
    for k, (fi, fo) in zip(keys[:-1], dims):
        w = _xavier_normal(k, fi, fo)                # xavier_normal_, gain=1
        b = jnp.zeros((1, fo), jnp.float32)          # constant_(bias, 0)
        params.append((w, b))
    wf = _xavier_uniform(keys[-1], 4, 1)             # fc: xavier_uniform_, gain=1
    bf = jnp.zeros((1, 1), jnp.float32)
    params.append((wf, bf))
    return params


# ----------------------------- reference (plain JAX) -------------------------

def reference_forward(timeless, params, *, match_kernel=True):
    """match_kernel=True mirrors the kernel numerics (bf16 MXU wide layers,
    f32 tail, tanh-form sigmoid); False is the pure-f32 / true-sigmoid model."""
    def sig(z):
        if match_kernel:
            return 0.5 * jnp.tanh(0.5 * z) + 0.5
        return jax.nn.sigmoid(z)

    h = timeless.astype(jnp.float32)
    for w, b in params[:4]:
        if match_kernel:
            z = jnp.dot(h.astype(jnp.bfloat16), w.astype(jnp.bfloat16),
                        preferred_element_type=jnp.float32) + b
        else:
            z = h @ w + b
        h = sig(z)
    w5, b5 = params[4]
    h = sig(h @ w5 + b5)
    wf, bf = params[5]
    return h @ wf + bf


if __name__ == "__main__":
    simulated_team_size = 8          # -> size_param = 16
    size_param = 2 * simulated_team_size

    key = jax.random.PRNGKey(0)
    k_x, k_p, k_x2 = jax.random.split(key, 3)

    params = make_params(k_p, simulated_team_size)
    prepared = prepare_params(params)

    # Case 1: small ragged batch (padding within a single-tile grid).
    batch = 20
    timeless = jax.random.normal(k_x, (batch, size_param), jnp.float32)
    out = jax.block_until_ready(footballnn_forward(timeless, prepared))
    assert out.shape == (batch, 1)

    ref_matched = reference_forward(timeless, params, match_kernel=True)
    ref_f32 = reference_forward(timeless, params, match_kernel=False)
    assert jnp.allclose(out, ref_matched, atol=1e-3, rtol=1e-3), \
        "mismatch vs kernel-matched reference"
    assert jnp.allclose(out, ref_f32, atol=5e-2, rtol=5e-2), \
        "mismatch vs f32 reference"

    # Case 2: multi-step grid + padding slice-off (forced small per-step cap).
    batch2 = 300
    timeless2 = jax.random.normal(k_x2, (batch2, size_param), jnp.float32)
    out2 = jax.block_until_ready(
        footballnn_forward(timeless2, prepared, max_rows_per_step=128))
    assert out2.shape == (batch2, 1)
    ref_matched2 = reference_forward(timeless2, params, match_kernel=True)
    assert jnp.allclose(out2, ref_matched2, atol=1e-3, rtol=1e-3), \
        "multi-tile mismatch vs kernel-matched reference"

    print("KERNEL_OK")
</pallas_src>

<mosaic_0001>
module attributes {stable_mosaic.version = 11 : i64} {
  func.func @footballnn_kernel(%arg0: i32, %arg1: memref<32x16xbf16, #tpu.memory_space<vmem>>, %arg2: memref<16x64xbf16, #tpu.memory_space<vmem>>, %arg3: memref<1x64xf32, #tpu.memory_space<vmem>>, %arg4: memref<64x32xbf16, #tpu.memory_space<vmem>>, %arg5: memref<1x32xf32, #tpu.memory_space<vmem>>, %arg6: memref<32x16xbf16, #tpu.memory_space<vmem>>, %arg7: memref<1x16xf32, #tpu.memory_space<vmem>>, %arg8: memref<16x16xbf16, #tpu.memory_space<vmem>>, %arg9: memref<1x16xf32, #tpu.memory_space<vmem>>, %arg10: memref<16x4xf32, #tpu.memory_space<vmem>>, %arg11: memref<1x4xf32, #tpu.memory_space<vmem>>, %arg12: memref<4x1xf32, #tpu.memory_space<vmem>>, %arg13: memref<1x1xf32, #tpu.memory_space<vmem>>, %arg14: memref<32x1xf32, #tpu.memory_space<vmem>>) attributes {dimension_semantics = [#tpu.dimension_semantics<parallel>], iteration_bounds = array<i64: 1>, scalar_prefetch = 0 : i64, scratch_operands = 0 : i64, tpu.core_type = #tpu.core_type<tc>, window_params = [{transform_indices = @transform_0, window_bounds = array<i64: 32, 16>}, {pipeline_mode = #tpu.pipeline_mode<synchronous>, transform_indices = @transform_1, window_bounds = array<i64: 16, 64>}, {pipeline_mode = #tpu.pipeline_mode<synchronous>, transform_indices = @transform_2, window_bounds = array<i64: 1, 64>}, {pipeline_mode = #tpu.pipeline_mode<synchronous>, transform_indices = @transform_3, window_bounds = array<i64: 64, 32>}, {pipeline_mode = #tpu.pipeline_mode<synchronous>, transform_indices = @transform_4, window_bounds = array<i64: 1, 32>}, {pipeline_mode = #tpu.pipeline_mode<synchronous>, transform_indices = @transform_5, window_bounds = array<i64: 32, 16>}, {pipeline_mode = #tpu.pipeline_mode<synchronous>, transform_indices = @transform_6, window_bounds = array<i64: 1, 16>}, {pipeline_mode = #tpu.pipeline_mode<synchronous>, transform_indices = @transform_7, window_bounds = array<i64: 16, 16>}, {pipeline_mode = #tpu.pipeline_mode<synchronous>, transform_indices = @transform_8, window_bounds = array<i64: 1, 16>}, {pipeline_mode = #tpu.pipeline_mode<synchronous>, transform_indices = @transform_9, window_bounds = array<i64: 16, 4>}, {pipeline_mode = #tpu.pipeline_mode<synchronous>, transform_indices = @transform_10, window_bounds = array<i64: 1, 4>}, {pipeline_mode = #tpu.pipeline_mode<synchronous>, transform_indices = @transform_11, window_bounds = array<i64: 4, 1>}, {pipeline_mode = #tpu.pipeline_mode<synchronous>, transform_indices = @transform_12, window_bounds = array<i64: 1, 1>}, {transform_indices = @transform_13, window_bounds = array<i64: 32, 1>}]} {
    %c0 = arith.constant 0 : index
    %c0_0 = arith.constant 0 : index
    %0 = vector.load %arg1[%c0, %c0_0] : memref<32x16xbf16, #tpu.memory_space<vmem>>, vector<32x16xbf16>
    %c0_1 = arith.constant 0 : index
    %c0_2 = arith.constant 0 : index
    %1 = vector.load %arg2[%c0_1, %c0_2] : memref<16x64xbf16, #tpu.memory_space<vmem>>, vector<16x64xbf16>
    %cst = arith.constant dense<0.000000e+00> : vector<32x64xf32>
    %2 = tpu.matmul %0, %1, %cst {dimension_numbers = #tpu.dot_dimension_numbers<[1], [0], [0], [1], [0, 0, 1, 1], [], []>} : vector<32x16xbf16>, vector<16x64xbf16>, vector<32x64xf32> -> vector<32x64xf32>
    %c0_3 = arith.constant 0 : index
    %c0_4 = arith.constant 0 : index
    %3 = vector.load %arg3[%c0_3, %c0_4] : memref<1x64xf32, #tpu.memory_space<vmem>>, vector<1x64xf32>
    %4 = vector.broadcast %3 : vector<1x64xf32> to vector<32x64xf32>
    %5 = arith.addf %2, %4 : vector<32x64xf32>
    %cst_5 = arith.constant 5.000000e-01 : f32
    %6 = vector.broadcast %cst_5 : f32 to vector<32x64xf32>
    %7 = arith.mulf %6, %5 : vector<32x64xf32>
    %8 = math.tanh %7 : vector<32x64xf32>
    %cst_6 = arith.constant 5.000000e-01 : f32
    %9 = vector.broadcast %cst_6 : f32 to vector<32x64xf32>
    %10 = arith.mulf %9, %8 : vector<32x64xf32>
    %cst_7 = arith.constant 5.000000e-01 : f32
    %11 = vector.broadcast %cst_7 : f32 to vector<32x64xf32>
    %12 = arith.addf %10, %11 : vector<32x64xf32>
    %13 = arith.truncf %12 : vector<32x64xf32> to vector<32x64xbf16>
    %c0_8 = arith.constant 0 : index
    %c0_9 = arith.constant 0 : index
    %14 = vector.load %arg4[%c0_8, %c0_9] : memref<64x32xbf16, #tpu.memory_space<vmem>>, vector<64x32xbf16>
    %cst_10 = arith.constant dense<0.000000e+00> : vector<32x32xf32>
    %15 = tpu.matmul %13, %14, %cst_10 {dimension_numbers = #tpu.dot_dimension_numbers<[1], [0], [0], [1], [0, 0, 1, 1], [], []>} : vector<32x64xbf16>, vector<64x32xbf16>, vector<32x32xf32> -> vector<32x32xf32>
    %c0_11 = arith.constant 0 : index
    %c0_12 = arith.constant 0 : index
    %16 = vector.load %arg5[%c0_11, %c0_12] : memref<1x32xf32, #tpu.memory_space<vmem>>, vector<1x32xf32>
    %17 = vector.broadcast %16 : vector<1x32xf32> to vector<32x32xf32>
    %18 = arith.addf %15, %17 : vector<32x32xf32>
    %cst_13 = arith.constant 5.000000e-01 : f32
    %19 = vector.broadcast %cst_13 : f32 to vector<32x32xf32>
    %20 = arith.mulf %19, %18 : vector<32x32xf32>
    %21 = math.tanh %20 : vector<32x32xf32>
    %cst_14 = arith.constant 5.000000e-01 : f32
    %22 = vector.broadcast %cst_14 : f32 to vector<32x32xf32>
    %23 = arith.mulf %22, %21 : vector<32x32xf32>
    %cst_15 = arith.constant 5.000000e-01 : f32
    %24 = vector.broadcast %cst_15 : f32 to vector<32x32xf32>
    %25 = arith.addf %23, %24 : vector<32x32xf32>
    %26 = arith.truncf %25 : vector<32x32xf32> to vector<32x32xbf16>
    %c0_16 = arith.constant 0 : index
    %c0_17 = arith.constant 0 : index
    %27 = vector.load %arg6[%c0_16, %c0_17] : memref<32x16xbf16, #tpu.memory_space<vmem>>, vector<32x16xbf16>
    %cst_18 = arith.constant dense<0.000000e+00> : vector<32x16xf32>
    %28 = tpu.matmul %26, %27, %cst_18 {dimension_numbers = #tpu.dot_dimension_numbers<[1], [0], [0], [1], [0, 0, 1, 1], [], []>} : vector<32x32xbf16>, vector<32x16xbf16>, vector<32x16xf32> -> vector<32x16xf32>
    %c0_19 = arith.constant 0 : index
    %c0_20 = arith.constant 0 : index
    %29 = vector.load %arg7[%c0_19, %c0_20] : memref<1x16xf32, #tpu.memory_space<vmem>>, vector<1x16xf32>
    %30 = vector.broadcast %29 : vector<1x16xf32> to vector<32x16xf32>
    %31 = arith.addf %28, %30 : vector<32x16xf32>
    %cst_21 = arith.constant 5.000000e-01 : f32
    %32 = vector.broadcast %cst_21 : f32 to vector<32x16xf32>
    %33 = arith.mulf %32, %31 : vector<32x16xf32>
    %34 = math.tanh %33 : vector<32x16xf32>
    %cst_22 = arith.constant 5.000000e-01 : f32
    %35 = vector.broadcast %cst_22 : f32 to vector<32x16xf32>
    %36 = arith.mulf %35, %34 : vector<32x16xf32>
    %cst_23 = arith.constant 5.000000e-01 : f32
    %37 = vector.broadcast %cst_23 : f32 to vector<32x16xf32>
    %38 = arith.addf %36, %37 : vector<32x16xf32>
    %39 = arith.truncf %38 : vector<32x16xf32> to vector<32x16xbf16>
    %c0_24 = arith.constant 0 : index
    %c0_25 = arith.constant 0 : index
    %40 = vector.load %arg8[%c0_24, %c0_25] : memref<16x16xbf16, #tpu.memory_space<vmem>>, vector<16x16xbf16>
    %cst_26 = arith.constant dense<0.000000e+00> : vector<32x16xf32>
    %41 = tpu.matmul %39, %40, %cst_26 {dimension_numbers = #tpu.dot_dimension_numbers<[1], [0], [0], [1], [0, 0, 1, 1], [], []>} : vector<32x16xbf16>, vector<16x16xbf16>, vector<32x16xf32> -> vector<32x16xf32>
    %c0_27 = arith.constant 0 : index
    %c0_28 = arith.constant 0 : index
    %42 = vector.load %arg9[%c0_27, %c0_28] : memref<1x16xf32, #tpu.memory_space<vmem>>, vector<1x16xf32>
    %43 = vector.broadcast %42 : vector<1x16xf32> to vector<32x16xf32>
    %44 = arith.addf %41, %43 : vector<32x16xf32>
    %cst_29 = arith.constant 5.000000e-01 : f32
    %45 = vector.broadcast %cst_29 : f32 to vector<32x16xf32>
    %46 = arith.mulf %45, %44 : vector<32x16xf32>
    %47 = math.tanh %46 : vector<32x16xf32>
    %cst_30 = arith.constant 5.000000e-01 : f32
    %48 = vector.broadcast %cst_30 : f32 to vector<32x16xf32>
    %49 = arith.mulf %48, %47 : vector<32x16xf32>
    %cst_31 = arith.constant 5.000000e-01 : f32
    %50 = vector.broadcast %cst_31 : f32 to vector<32x16xf32>
    %51 = arith.addf %49, %50 : vector<32x16xf32>
    %c0_32 = arith.constant 0 : index
    %c0_33 = arith.constant 0 : index
    %52 = vector.load %arg10[%c0_32, %c0_33] : memref<16x4xf32, #tpu.memory_space<vmem>>, vector<16x4xf32>
    %cst_34 = arith.constant dense<0.000000e+00> : vector<32x4xf32>
    %53 = tpu.matmul %51, %52, %cst_34 {dimension_numbers = #tpu.dot_dimension_numbers<[1], [0], [0], [1], [0, 0, 1, 1], [], []>} : vector<32x16xf32>, vector<16x4xf32>, vector<32x4xf32> -> vector<32x4xf32>
    %c0_35 = arith.constant 0 : index
    %c0_36 = arith.constant 0 : index
    %54 = vector.load %arg11[%c0_35, %c0_36] : memref<1x4xf32, #tpu.memory_space<vmem>>, vector<1x4xf32>
    %55 = vector.broadcast %54 : vector<1x4xf32> to vector<32x4xf32>
    %56 = arith.addf %53, %55 : vector<32x4xf32>
    %cst_37 = arith.constant 5.000000e-01 : f32
    %57 = vector.broadcast %cst_37 : f32 to vector<32x4xf32>
    %58 = arith.mulf %57, %56 : vector<32x4xf32>
    %59 = math.tanh %58 : vector<32x4xf32>
    %cst_38 = arith.constant 5.000000e-01 : f32
    %60 = vector.broadcast %cst_38 : f32 to vector<32x4xf32>
    %61 = arith.mulf %60, %59 : vector<32x4xf32>
    %cst_39 = arith.constant 5.000000e-01 : f32
    %62 = vector.broadcast %cst_39 : f32 to vector<32x4xf32>
    %63 = arith.addf %61, %62 : vector<32x4xf32>
    %c0_40 = arith.constant 0 : index
    %c0_41 = arith.constant 0 : index
    %64 = vector.load %arg12[%c0_40, %c0_41] : memref<4x1xf32, #tpu.memory_space<vmem>>, vector<4x1xf32>
    %cst_42 = arith.constant dense<0.000000e+00> : vector<32x1xf32>
    %65 = tpu.matmul %63, %64, %cst_42 {dimension_numbers = #tpu.dot_dimension_numbers<[1], [0], [0], [1], [0, 0, 1, 1], [], []>} : vector<32x4xf32>, vector<4x1xf32>, vector<32x1xf32> -> vector<32x1xf32>
    %c0_43 = arith.constant 0 : index
    %c0_44 = arith.constant 0 : index
    %66 = vector.load %arg13[%c0_43, %c0_44] : memref<1x1xf32, #tpu.memory_space<vmem>>, vector<1x1xf32>
    %67 = vector.broadcast %66 : vector<1x1xf32> to vector<32x1xf32>
    %68 = arith.addf %65, %67 : vector<32x1xf32>
    %c0_45 = arith.constant 0 : index
    %c0_46 = arith.constant 0 : index
    %69 = vector.load %arg14[%c0_45, %c0_46] : memref<32x1xf32, #tpu.memory_space<vmem>>, vector<32x1xf32>
    tpu.vector_store %arg14[%c0_45, %c0_46], %68 {strides = array<i32>} : memref<32x1xf32, #tpu.memory_space<vmem>>, vector<32x1xf32>,
    return
  }
  func.func @transform_0(%arg0: i32) -> (i32, i32) {
    %c0_i32 = arith.constant 0 : i32
    %c0_i32_0 = arith.constant 0 : i32
    return %arg0, %c0_i32 : i32, i32
  }
  func.func @transform_1(%arg0: i32) -> (i32, i32) {
    %c0_i32 = arith.constant 0 : i32
    %c0_i32_0 = arith.constant 0 : i32
    %c0_i32_1 = arith.constant 0 : i32
    return %c0_i32, %c0_i32_0 : i32, i32
  }
  func.func @transform_2(%arg0: i32) -> (i32, i32) {
    %c0_i32 = arith.constant 0 : i32
    %c0_i32_0 = arith.constant 0 : i32
    %c0_i32_1 = arith.constant 0 : i32
    return %c0_i32, %c0_i32_0 : i32, i32
  }
  func.func @transform_3(%arg0: i32) -> (i32, i32) {
    %c0_i32 = arith.constant 0 : i32
    %c0_i32_0 = arith.constant 0 : i32
    %c0_i32_1 = arith.constant 0 : i32
    return %c0_i32, %c0_i32_0 : i32, i32
  }
  func.func @transform_4(%arg0: i32) -> (i32, i32) {
    %c0_i32 = arith.constant 0 : i32
    %c0_i32_0 = arith.constant 0 : i32
    %c0_i32_1 = arith.constant 0 : i32
    return %c0_i32, %c0_i32_0 : i32, i32
  }
  func.func @transform_5(%arg0: i32) -> (i32, i32) {
    %c0_i32 = arith.constant 0 : i32
    %c0_i32_0 = arith.constant 0 : i32
    %c0_i32_1 = arith.constant 0 : i32
    return %c0_i32, %c0_i32_0 : i32, i32
  }
  func.func @transform_6(%arg0: i32) -> (i32, i32) {
    %c0_i32 = arith.constant 0 : i32
    %c0_i32_0 = arith.constant 0 : i32
    %c0_i32_1 = arith.constant 0 : i32
    return %c0_i32, %c0_i32_0 : i32, i32
  }
  func.func @transform_7(%arg0: i32) -> (i32, i32) {
    %c0_i32 = arith.constant 0 : i32
    %c0_i32_0 = arith.constant 0 : i32
    %c0_i32_1 = arith.constant 0 : i32
    return %c0_i32, %c0_i32_0 : i32, i32
  }
  func.func @transform_8(%arg0: i32) -> (i32, i32) {
    %c0_i32 = arith.constant 0 : i32
    %c0_i32_0 = arith.constant 0 : i32
    %c0_i32_1 = arith.constant 0 : i32
    return %c0_i32, %c0_i32_0 : i32, i32
  }
  func.func @transform_9(%arg0: i32) -> (i32, i32) {
    %c0_i32 = arith.constant 0 : i32
    %c0_i32_0 = arith.constant 0 : i32
    %c0_i32_1 = arith.constant 0 : i32
    return %c0_i32, %c0_i32_0 : i32, i32
  }
  func.func @transform_10(%arg0: i32) -> (i32, i32) {
    %c0_i32 = arith.constant 0 : i32
    %c0_i32_0 = arith.constant 0 : i32
    %c0_i32_1 = arith.constant 0 : i32
    return %c0_i32, %c0_i32_0 : i32, i32
  }
  func.func @transform_11(%arg0: i32) -> (i32, i32) {
    %c0_i32 = arith.constant 0 : i32
    %c0_i32_0 = arith.constant 0 : i32
    %c0_i32_1 = arith.constant 0 : i32
    return %c0_i32, %c0_i32_0 : i32, i32
  }
  func.func @transform_12(%arg0: i32) -> (i32, i32) {
    %c0_i32 = arith.constant 0 : i32
    %c0_i32_0 = arith.constant 0 : i32
    %c0_i32_1 = arith.constant 0 : i32
    return %c0_i32, %c0_i32_0 : i32, i32
  }
  func.func @transform_13(%arg0: i32) -> (i32, i32) {
    %c0_i32 = arith.constant 0 : i32
    %c0_i32_0 = arith.constant 0 : i32
    return %arg0, %c0_i32 : i32, i32
  }
}

</mosaic_0001>

<bundles_post_ra>
// kernel: footballnn_forward.1
= control target key start
LH: loop header
LB: loop body
LE: loop exit
PB: predicated region body
PF: predicated region fallthrough
CT: control target
= control target key end

     0   :  { %vm73_vm0 = vcmask 130048   ;;  %vm153_vm1 = vcmask 523264   ;;  %vm217_vm2 = vcmask 261120   ;;  %vm395_vm3 = vcmask 1043456   ;;  %s703_s1 = inlined_call_operand.vmem [shape: bf16[16,64], index: 1, kind: input, shape index: {}]   ;;  %s704_s0 = inlined_call_operand.vmem [shape: bf16[32,16], index: 0, kind: input, shape index: {}]   ;;  %s705_s2 = inlined_call_operand.vmem [shape: f32[1,64], index: 2, kind: input, shape index: {}]   ;;  %s706_s4 = inlined_call_operand.vmem [shape: f32[1,32], index: 4, kind: input, shape index: {}]   ;;  %s707_s3 = inlined_call_operand.vmem [shape: bf16[64,32], index: 3, kind: input, shape index: {}]   ;;  %s708_s6 = inlined_call_operand.vmem [shape: f32[1,16], index: 6, kind: input, shape index: {}]   ;;  %s709_s5 = inlined_call_operand.vmem [shape: bf16[32,16], index: 5, kind: input, shape index: {}]   ;;  %s710_s8 = inlined_call_operand.vmem [shape: f32[1,16], index: 8, kind: input, shape index: {}]   ;;  %s711_s7 = inlined_call_operand.vmem [shape: bf16[16,16], index: 7, kind: input, shape index: {}]   ;;  %s712_s10 = inlined_call_operand.vmem [shape: f32[1,4], index: 10, kind: input, shape index: {}]   ;;  %s713_s9 = inlined_call_operand.vmem [shape: f32[16,4], index: 9, kind: input, shape index: {}]   ;;  %s714_s11 = inlined_call_operand.vmem [shape: f32[4,1], index: 11, kind: input, shape index: {}]   ;;  %s715_s12 = inlined_call_operand.<no memory space> [shape: f32[1,1], index: 12, kind: input, shape index: {}]   ;;  %s716_s13 = inlined_call_operand.vmem [shape: f32[32,1], index: 13, kind: output, shape index: {}]  }
   0x1   :  { %v496_v0 = vld [vmem:[%s703_s1] sm:$0xff]  ;;  %v495_v2 = vld [vmem:[%s704_s0 + $0x8] sm:$0xff]  ;;  %v500_v3 = vld [vmem:[%s707_s3 + $0x18] sm:$0xff]  ;;  %vm382_vm4 = vcmask 31744   ;;  %vm428_vm5 = vcmask 7168  }
   0x2   :  { %v494_v1 = vld [vmem:[%s704_s0] sm:$0xff]  ;;  %87 = vmatpush.bf16.msra.mxu0 %v496_v0  ;;  %504 = vmatpush.bf16.msra.mxu2 %v496_v0  ;;  %v499_v4 = vld [vmem:[%s707_s3 + $0x10] sm:$0xff]  ;;  %v498_v5 = vld [vmem:[%s707_s3 + $0x8] sm:$0xff] }
   0x3   :  { %164 = vmatpush.bf16.msra.mxu1 %v500_v3  ;;  %v497_v6 = vld [vmem:[%s707_s3] sm:$0xff]  ;;  %v502_v34 = vld [vmem:[%s709_s5 + $0x8] sm:$0xff] }
   0x4   :  { %v506_v7 = vld [vmem:[%s705_s2] ss:$0 sm:$0xff] }
   0x5   :  { %449 = vmatmul.msk.bf16.vlgmr.msra.gmra.mxu0 %vm73_vm0, %v494_v1  ;;  %450 = vmatmul.msk.bf16.vlgmr.msra.gmra.mxu2 %vm73_vm0, %v495_v2  ;;  %v501_v35 = vld [vmem:[%s709_s5] sm:$0xff] }
   0x6   :  { %230 = vmatpush.bf16.msrb.mxu2 %v502_v34  ;;  %v507_v36 = vld [vmem:[%s706_s4] ss:$0 sm:$0xff] }
   0x7   :  { %165 = vmatpush.bf16.msra.mxu1 %v499_v4  ;;  %v503_v63 = vld [vmem:[%s711_s7] sm:$0xff] }
   0x8   :  { %286 = vmatpush.bf16.msra.mxu3 %v503_v63  ;;  %v508_v0 = vld [vmem:[%s708_s6] ss:$0 sm:$0xff] }
   0x9   :  { %v377_v34 = vld [vmem:[%s714_s11] sm:$0xf] }
   0xa   :  { %231 = vmatpush.bf16.msrb.mxu2 %v501_v35 }
   0xb   :  { %166 = vmatpush.bf16.msra.mxu1 %v498_v5 }
   0xc   :  { %505 = vmatpush.msk.msrb.mxu3 %vm395_vm3, %v377_v34 }
   0xf   :  { %167 = vmatpush.bf16.msra.mxu1 %v497_v6 }
  0x13   :  { %489 = vmatpush.msk.msrb.mxu1 %vm395_vm3, %v377_v34 }
  0x82   :  { %v89_v8 = vpop.f32.mrf.mxu0 }
  0x83   :  { %v90_v9 = vadd.f32 %v506_v7, %v89_v8 }
  0x85   :  { %v99_v10 = vmul.f32 0.5, %v90_v9 }
  0x87   :  { %512 = vtanh.f32 %v99_v10 }
  0x88   :  { %v94_v11 = vpop.f32.mrf.mxu2 }
  0x89   :  { %v95_v15 = vadd.f32 %v506_v7, %v94_v11 }
  0x8a   :  { %v91_v12 = vpop.f32.mrf.mxu0 }
  0x8b   :  { %v92_v13 = vadd.f32 %v506_v7, %v91_v12  ;;  %v101_v20 = vmul.f32 0.5, %v95_v15 }
  0x8d   :  { %v100_v14 = vmul.f32 0.5, %v92_v13  ;;  %v513_v17 = vpop.eup %512 }
  0x8e   :  { %v107_v19 = vmul.f32 0.5, %v513_v17 }
  0x8f   :  { %514 = vtanh.f32 %v100_v14 }
  0x90   :  { %v96_v16 = vpop.f32.mrf.mxu2  ;;  %v111_v24 = vadd.f32 0.5, %v107_v19  ;;  %516 = vtanh.f32 %v101_v20 }
  0x91   :  { %v97_v18 = vadd.f32 %v506_v7, %v96_v16 }
  0x93   :  { %v102_v22 = vmul.f32 0.5, %v97_v18 }
  0x95   :  { %v515_v21 = vpop.eup %514  ;;  %518 = vtanh.f32 %v102_v22 }
  0x96   :  { %v108_v23 = vmul.f32 0.5, %v515_v21  ;;  %v517_v27 = vpop.eup %516 }
  0x97   :  { %v109_v29 = vmul.f32 0.5, %v517_v27  ;;  %v315_v27 = vld [vmem:[%s713_s9 + $0x8] sm:$0xff] }
  0x98   :  { %v112_v25 = vadd.f32 0.5, %v108_v23  ;;  %346 = vmatpush.msrb.mxu0 %v315_v27 }
  0x99   :  { %v113_v31 = vadd.f32 0.5, %v109_v29  ;;  %v509_v29 = vld [vmem:[%s710_s8] ss:$0 sm:$0xff] }
  0x9a   :  { %v115_v26 = vpack.c.bf16 %v112_v25, %v111_v24 }
  0x9b   :  { %v519_v28 = vpop.eup %518 }
  0x9c   :  { %467 = vmatmul.msk.bf16.vlgmr.msra.gmra.mxu1 %vm153_vm1, %v115_v26  ;;  %v110_v30 = vmul.f32 0.5, %v519_v28  ;;  %v314_v28 = vld [vmem:[%s713_s9] sm:$0xff] }
  0x9d   :  { %347 = vmatpush.msrb.mxu0 %v314_v28 }
  0x9e   :  { %v114_v32 = vadd.f32 0.5, %v110_v30 }
  0xa0   :  { %v116_v33 = vpack.c.bf16 %v114_v32, %v113_v31 }
  0xac   :  { %468 = vmatmul.msk.bf16.gmra.mxu1 %vm153_vm1, %v116_v33 }
 0x119   :  { %v169_v37 = vpop.f32.mrf.mxu1 }
 0x11a   :  { %v170_v38 = vadd.f32 %v507_v36, %v169_v37 }
 0x11c   :  { %v179_v39 = vmul.f32 0.5, %v170_v38 }
 0x11e   :  { %520 = vtanh.f32 %v179_v39 }
 0x121   :  { %v171_v40 = vpop.f32.mrf.mxu1 }
 0x122   :  { %v172_v41 = vadd.f32 %v507_v36, %v171_v40 }
 0x124   :  { %v180_v42 = vmul.f32 0.5, %v172_v41  ;;  %v521_v43 = vpop.eup %520 }
 0x125   :  { %v187_v46 = vmul.f32 0.5, %v521_v43 }
 0x126   :  { %522 = vtanh.f32 %v180_v42 }
 0x127   :  { %v191_v50 = vadd.f32 0.5, %v187_v46 }
 0x129   :  { %v174_v44 = vpop.f32.mrf.mxu1 }
 0x12a   :  { %v175_v45 = vadd.f32 %v507_v36, %v174_v44 }
 0x12c   :  { %v523_v47 = vpop.eup %522  ;;  %v181_v49 = vmul.f32 0.5, %v175_v45 }
 0x12d   :  { %v188_v48 = vmul.f32 0.5, %v523_v47 }
 0x12e   :  { %524 = vtanh.f32 %v181_v49 }
 0x12f   :  { %v192_v51 = vadd.f32 0.5, %v188_v48 }
 0x131   :  { %v195_v52 = vpack.c.bf16 %v192_v51, %v191_v50  ;;  %v176_v53 = vpop.f32.mrf.mxu1 }
 0x132   :  { %v177_v54 = vadd.f32 %v507_v36, %v176_v53 }
 0x133   :  { %477 = vmatmul.msk.bf16.vlgmr.msrb.gmra.mxu2 %vm217_vm2, %v195_v52 }
 0x134   :  { %v182_v55 = vmul.f32 0.5, %v177_v54  ;;  %v525_v56 = vpop.eup %524 }
 0x135   :  { %v189_v57 = vmul.f32 0.5, %v525_v56 }
 0x136   :  { %526 = vtanh.f32 %v182_v55  ;;  %v510_v55 = vld [vmem:[%s712_s10] ss:$0 sm:$0xff] }
 0x137   :  { %v193_v60 = vadd.f32 0.5, %v189_v57 }
 0x13c   :  { %v527_v58 = vpop.eup %526 }
 0x13d   :  { %v190_v59 = vmul.f32 0.5, %v527_v58 }
 0x13f   :  { %v194_v61 = vadd.f32 0.5, %v190_v59 }
 0x141   :  { %v196_v62 = vpack.c.bf16 %v194_v61, %v193_v60  ;;  %v18_v60 = vstv %s715_s12 }
 0x142   :  { %19 = vst [vmem:[#allocation2] sm:$0x1] %v18_v60 }
 0x143   :  { %478 = vmatmul.msk.bf16.gmra.mxu2 %vm217_vm2, %v196_v62 }
 0x1b6   :  { %v233_v1 = vpop.f32.mrf.mxu2 }
 0x1b7   :  { %v234_v2 = vadd.f32 %v508_v0, %v233_v1 }
 0x1b9   :  { %v243_v3 = vmul.f32 0.5, %v234_v2 }
 0x1bb   :  { %528 = vtanh.f32 %v243_v3 }
 0x1be   :  { %v235_v4 = vpop.f32.mrf.mxu2 }
 0x1bf   :  { %v236_v5 = vadd.f32 %v508_v0, %v235_v4 }
 0x1c1   :  { %v244_v6 = vmul.f32 0.5, %v236_v5  ;;  %v529_v7 = vpop.eup %528 }
 0x1c2   :  { %v251_v10 = vmul.f32 0.5, %v529_v7 }
 0x1c3   :  { %530 = vtanh.f32 %v244_v6 }
 0x1c4   :  { %v255_v14 = vadd.f32 0.5, %v251_v10 }
 0x1c6   :  { %v238_v8 = vpop.f32.mrf.mxu2 }
 0x1c7   :  { %v239_v9 = vadd.f32 %v508_v0, %v238_v8 }
 0x1c9   :  { %v531_v11 = vpop.eup %530  ;;  %v245_v13 = vmul.f32 0.5, %v239_v9 }
 0x1ca   :  { %v252_v12 = vmul.f32 0.5, %v531_v11 }
 0x1cb   :  { %532 = vtanh.f32 %v245_v13 }
 0x1cc   :  { %v256_v15 = vadd.f32 0.5, %v252_v12 }
 0x1ce   :  { %v240_v16 = vpop.f32.mrf.mxu2  ;;  %v259_v17 = vpack.c.bf16 %v256_v15, %v255_v14 }
 0x1cf   :  { %v241_v18 = vadd.f32 %v508_v0, %v240_v16 }
 0x1d0   :  { %483 = vmatmul.msk.bf16.vlgmr.msra.gmra.mxu3 %vm73_vm0, %v259_v17  ;;  %v511_v17 = vld [vmem:[#allocation2] ss:$0 sm:$0xff] }
 0x1d1   :  { %v246_v19 = vmul.f32 0.5, %v241_v18  ;;  %v533_v20 = vpop.eup %532 }
 0x1d2   :  { %v253_v21 = vmul.f32 0.5, %v533_v20 }
 0x1d3   :  { %534 = vtanh.f32 %v246_v19 }
 0x1d4   :  { %v257_v24 = vadd.f32 0.5, %v253_v21 }
 0x1d9   :  { %v535_v22 = vpop.eup %534 }
 0x1da   :  { %v254_v23 = vmul.f32 0.5, %v535_v22 }
 0x1dc   :  { %v258_v25 = vadd.f32 0.5, %v254_v23 }
 0x1de   :  { %v260_v26 = vpack.c.bf16 %v258_v25, %v257_v24 }
 0x1e0   :  { %484 = vmatmul.msk.bf16.gmra.mxu3 %vm73_vm0, %v260_v26 }
 0x253   :  { %v288_v30 = vpop.f32.mrf.mxu3 }
 0x254   :  { %v289_v31 = vadd.f32 %v509_v29, %v288_v30 }
 0x256   :  { %v298_v32 = vmul.f32 0.5, %v289_v31 }
 0x258   :  { %536 = vtanh.f32 %v298_v32 }
 0x25b   :  { %v290_v33 = vpop.f32.mrf.mxu3 }
 0x25c   :  { %v291_v35 = vadd.f32 %v509_v29, %v290_v33 }
 0x25e   :  { %v537_v36 = vpop.eup %536  ;;  %v299_v37 = vmul.f32 0.5, %v291_v35 }
 0x25f   :  { %v306_v38 = vmul.f32 0.5, %v537_v36 }
 0x260   :  { %538 = vtanh.f32 %v299_v37 }
 0x261   :  { %v310_v39 = vadd.f32 0.5, %v306_v38 }
 0x263   :  { %v293_v40 = vpop.f32.mrf.mxu3  ;;  %485 = vmatmul.msk.f32.vlgmr.msrb.gmra.mxu0 %vm73_vm0, %v310_v39 }
 0x264   :  { %v294_v41 = vadd.f32 %v509_v29, %v293_v40 }
 0x266   :  { %v539_v42 = vpop.eup %538  ;;  %v300_v43 = vmul.f32 0.5, %v294_v41 }
 0x267   :  { %v307_v44 = vmul.f32 0.5, %v539_v42 }
 0x268   :  { %540 = vtanh.f32 %v300_v43 }
 0x269   :  { %v311_v45 = vadd.f32 0.5, %v307_v44 }
 0x26b   :  { %v295_v46 = vpop.f32.mrf.mxu3  ;;  %486 = vmatmul.msk.f32.gmra.mxu0 %vm73_vm0, %v311_v45 }
 0x26c   :  { %v296_v47 = vadd.f32 %v509_v29, %v295_v46 }
 0x26e   :  { %v541_v48 = vpop.eup %540  ;;  %v301_v49 = vmul.f32 0.5, %v296_v47 }
 0x26f   :  { %v308_v50 = vmul.f32 0.5, %v541_v48 }
 0x270   :  { %542 = vtanh.f32 %v301_v49 }
 0x271   :  { %v312_v51 = vadd.f32 0.5, %v308_v50 }
 0x273   :  { %487 = vmatmul.msk.f32.gmra.mxu0 %vm73_vm0, %v312_v51 }
 0x276   :  { %v543_v52 = vpop.eup %542 }
 0x277   :  { %v309_v53 = vmul.f32 0.5, %v543_v52 }
 0x279   :  { %v313_v54 = vadd.f32 0.5, %v309_v53 }
 0x27b   :  { %488 = vmatmul.msk.f32.gmra.mxu0 %vm73_vm0, %v313_v54 }
 0x2e0   :  { %v349_v56 = vpop.f32.mrf.mxu0 }
 0x2e1   :  { %v350_v57 = vadd.f32 %v510_v55, %v349_v56 }
 0x2e3   :  { %v361_v58 = vmul.f32 0.5, %v350_v57 }
 0x2e5   :  { %544 = vtanh.f32 %v361_v58 }
 0x2e8   :  { %v352_v59 = vpop.f32.mrf.mxu0 }
 0x2e9   :  { %v353_v61 = vadd.f32 %v510_v55, %v352_v59 }
 0x2eb   :  { %v545_v62 = vpop.eup %544  ;;  %v362_v63 = vmul.f32 0.5, %v353_v61 }
 0x2ec   :  { %v369_v0 = vmul.f32 0.5, %v545_v62 }
 0x2ed   :  { %546 = vtanh.f32 %v362_v63 }
 0x2ee   :  { %v373_v1 = vadd.f32 0.5, %v369_v0 }
 0x2f0   :  { %v355_v2 = vpop.f32.mrf.mxu0  ;;  %490 = vmatmul.msk.f32.vlgmr.msrb.gmra.mxu1 %vm382_vm4, %v373_v1 }
 0x2f1   :  { %v356_v3 = vadd.f32 %v510_v55, %v355_v2 }
 0x2f3   :  { %v547_v4 = vpop.eup %546  ;;  %v363_v5 = vmul.f32 0.5, %v356_v3 }
 0x2f4   :  { %v370_v6 = vmul.f32 0.5, %v547_v4 }
 0x2f5   :  { %548 = vtanh.f32 %v363_v5 }
 0x2f6   :  { %v374_v7 = vadd.f32 0.5, %v370_v6 }
 0x2f8   :  { %v358_v8 = vpop.f32.mrf.mxu0  ;;  %491 = vmatmul.msk.f32.vlgmr.msrb.gmra.mxu3 %vm382_vm4, %v374_v7 }
 0x2f9   :  { %v359_v9 = vadd.f32 %v510_v55, %v358_v8 }
 0x2fb   :  { %v549_v10 = vpop.eup %548  ;;  %v364_v11 = vmul.f32 0.5, %v359_v9 }
 0x2fc   :  { %v371_v12 = vmul.f32 0.5, %v549_v10 }
 0x2fd   :  { %550 = vtanh.f32 %v364_v11 }
 0x2fe   :  { %v375_v13 = vadd.f32 0.5, %v371_v12 }
 0x300   :  { %492 = vmatmul.msk.f32.gmra.mxu3 %vm382_vm4, %v375_v13 }
 0x303   :  { %v551_v14 = vpop.eup %550 }
 0x304   :  { %v372_v15 = vmul.f32 0.5, %v551_v14 }
 0x306   :  { %v376_v16 = vadd.f32 0.5, %v372_v15 }
 0x308   :  { %493 = vmatmul.msk.f32.gmra.mxu3 %vm382_vm4, %v376_v16 }
 0x36d   :  { %v416_v18 = vpop.f32.mrf.mxu1 }
 0x36e   :  { %v417_v19 = vadd.f32 %v511_v17, %v416_v18 }
 0x370   :  { %429 = vst.msk [vmem:[%s716_s13] sm:$0xff] %vm428_vm5, %v417_v19 }
 0x37b   :  { %v419_v20 = vpop.f32.mrf.mxu3 }
 0x37c   :  { %v420_v21 = vadd.f32 %v511_v17, %v419_v20 }
 0x37e   :  { %430 = vst.msk [vmem:[%s716_s13 + $0x8] sm:$0xff] %vm428_vm5, %v420_v21 }
 0x383   :  { %v422_v22 = vpop.f32.mrf.mxu3 }
 0x384   :  { %v423_v23 = vadd.f32 %v511_v17, %v422_v22 }
 0x386   :  { %431 = vst.msk [vmem:[%s716_s13 + $0x10] sm:$0xff] %vm428_vm5, %v423_v23 }
 0x38b   :  { %v425_v24 = vpop.f32.mrf.mxu3 }
 0x38c   :  { %v426_v25 = vadd.f32 %v511_v17, %v425_v24 }
 0x38e   :  { %432 = vst.msk [vmem:[%s716_s13 + $0x18] sm:$0xff] %vm428_vm5, %v426_v25 }

</bundles_post_ra>
